<compile_context>
chip_gen: v7x
topology: tpu7x:2x2x1
jax: 0.10.0
libtpu: 0.0.40
codegen_flags: <defaults>
</compile_context>

<pallas_src>
import jax
import jax.numpy as jnp
from jax.experimental import pallas as pl
from jax.experimental.pallas import tpu as pltpu


def _scaler_kernel(x_ref, mu_ref, scale_ref, o_ref):
    # x_ref: (R, F);  mu_ref / scale_ref: (1, F) -> broadcast over the R rows.
    x = x_ref[...].astype(jnp.float32)
    y = (x - mu_ref[...]) * scale_ref[...]
    o_ref[...] = y.astype(o_ref.dtype)


def spec_standard_scaler(x, mean, std, eps=1e-10, row_tile=1024):
    """(X - mu) / max(std, eps) broadcast along the last (frequency) axis.

    Args:
        x:    [B, C, T, F] (f32 or bf16)
        mean: [F]
        std:  [F]
    Returns:
        same shape/dtype as x.
    """
    B, C, T, F = x.shape
    rows = B * C * T

    # One-time F-sized precompute in plain JAX: reciprocal of clamped std.
    mu = mean.astype(jnp.float32).reshape(1, F)
    scale = (1.0 / jnp.maximum(std.astype(jnp.float32), jnp.float32(eps))).reshape(1, F)

    # Free reshape: (B, C, T, F) is contiguous -> (rows, F).
    x2 = x.reshape(rows, F)

    # Row-tile selection:
    #  * rows <= row_tile: single full-extent block (always layout-valid).
    #  * otherwise: row_tile rows per block (multiple of 8 sublanes); the
    #    ragged tail block, if any, is clamped by Pallas (safe for elementwise).
    if rows <= row_tile:
        R = rows
    else:
        R = row_tile
    grid = (pl.cdiv(rows, R),)

    out = pl.pallas_call(
        _scaler_kernel,
        out_shape=jax.ShapeDtypeStruct((rows, F), x.dtype),
        grid_spec=pltpu.PrefetchScalarGridSpec(
            num_scalar_prefetch=0,
            grid=grid,
            in_specs=[
                pl.BlockSpec((R, F), lambda i: (i, 0)),   # x tile
                pl.BlockSpec((1, F), lambda i: (0, 0)),   # mu   (resident)
                pl.BlockSpec((1, F), lambda i: (0, 0)),   # scale (resident)
            ],
            out_specs=pl.BlockSpec((R, F), lambda i: (i, 0)),
        ),
        compiler_params=pltpu.CompilerParams(
            dimension_semantics=("parallel",),
        ),
    )(x2, mu, scale)

    return out.reshape(B, C, T, F)


if __name__ == "__main__":
    # Spectrogram-like input: [batch=2, channel=1, time=16, freq=128].
    B, C, T, F = 2, 1, 16, 128
    key = jax.random.PRNGKey(0)
    kx, km, ks = jax.random.split(key, 3)

    x = jax.random.normal(kx, (B, C, T, F), dtype=jnp.float32)
    mean = jax.random.normal(km, (F,), dtype=jnp.float32)
    std = jnp.abs(jax.random.normal(ks, (F,), dtype=jnp.float32)) + 0.1

    y = spec_standard_scaler(x, mean, std)
    y = jax.block_until_ready(y)

    # Reference (same math as the PyTorch forward).
    sigma_ref = jnp.maximum(std, 1e-10)[None, None, None, :]
    mu_ref = mean[None, None, None, :]
    y_ref = (x - mu_ref) / sigma_ref
    assert jnp.allclose(y, y_ref, atol=1e-6, rtol=1e-6), "mismatch vs reference"

    # Also exercise a shape large enough to use multiple row tiles.
    B2, C2, T2, F2 = 4, 2, 512, 128
    x_big = jax.random.normal(jax.random.PRNGKey(1), (B2, C2, T2, F2), dtype=jnp.float32)
    mean2 = jax.random.normal(km, (F2,), dtype=jnp.float32)
    std2 = jnp.abs(jax.random.normal(ks, (F2,), dtype=jnp.float32)) + 0.1
    y_big = jax.block_until_ready(spec_standard_scaler(x_big, mean2, std2))
    y_big_ref = (x_big - mean2[None, None, None, :]) / jnp.maximum(std2, 1e-10)[None, None, None, :]
    assert jnp.allclose(y_big, y_big_ref, atol=1e-6, rtol=1e-6), "mismatch vs reference (big)"

    print("KERNEL_OK")
</pallas_src>

<mosaic_0001>
module attributes {stable_mosaic.version = 11 : i64} {
  func.func @_scaler_kernel(%arg0: i32, %arg1: memref<32x128xf32, #tpu.memory_space<vmem>>, %arg2: memref<1x128xf32, #tpu.memory_space<vmem>>, %arg3: memref<1x128xf32, #tpu.memory_space<vmem>>, %arg4: memref<32x128xf32, #tpu.memory_space<vmem>>) attributes {dimension_semantics = [#tpu.dimension_semantics<parallel>], iteration_bounds = array<i64: 1>, scalar_prefetch = 0 : i64, scratch_operands = 0 : i64, tpu.core_type = #tpu.core_type<tc>, window_params = [{transform_indices = @transform_0, window_bounds = array<i64: 32, 128>}, {pipeline_mode = #tpu.pipeline_mode<synchronous>, transform_indices = @transform_1, window_bounds = array<i64: 1, 128>}, {pipeline_mode = #tpu.pipeline_mode<synchronous>, transform_indices = @transform_2, window_bounds = array<i64: 1, 128>}, {transform_indices = @transform_3, window_bounds = array<i64: 32, 128>}]} {
    %c0 = arith.constant 0 : index
    %c0_0 = arith.constant 0 : index
    %0 = vector.load %arg1[%c0, %c0_0] : memref<32x128xf32, #tpu.memory_space<vmem>>, vector<32x128xf32>
    %c0_1 = arith.constant 0 : index
    %c0_2 = arith.constant 0 : index
    %1 = vector.load %arg2[%c0_1, %c0_2] : memref<1x128xf32, #tpu.memory_space<vmem>>, vector<1x128xf32>
    %2 = vector.broadcast %1 : vector<1x128xf32> to vector<32x128xf32>
    %3 = arith.subf %0, %2 : vector<32x128xf32>
    %c0_3 = arith.constant 0 : index
    %c0_4 = arith.constant 0 : index
    %4 = vector.load %arg3[%c0_3, %c0_4] : memref<1x128xf32, #tpu.memory_space<vmem>>, vector<1x128xf32>
    %5 = vector.broadcast %4 : vector<1x128xf32> to vector<32x128xf32>
    %6 = arith.mulf %3, %5 : vector<32x128xf32>
    %c0_5 = arith.constant 0 : index
    %c0_6 = arith.constant 0 : index
    %7 = vector.load %arg4[%c0_5, %c0_6] : memref<32x128xf32, #tpu.memory_space<vmem>>, vector<32x128xf32>
    tpu.vector_store %arg4[%c0_5, %c0_6], %6 {strides = array<i32>} : memref<32x128xf32, #tpu.memory_space<vmem>>, vector<32x128xf32>,
    return
  }
  func.func @transform_0(%arg0: i32) -> (i32, i32) {
    %c0_i32 = arith.constant 0 : i32
    %c0_i32_0 = arith.constant 0 : i32
    return %arg0, %c0_i32 : i32, i32
  }
  func.func @transform_1(%arg0: i32) -> (i32, i32) {
    %c0_i32 = arith.constant 0 : i32
    %c0_i32_0 = arith.constant 0 : i32
    %c0_i32_1 = arith.constant 0 : i32
    return %c0_i32, %c0_i32_0 : i32, i32
  }
  func.func @transform_2(%arg0: i32) -> (i32, i32) {
    %c0_i32 = arith.constant 0 : i32
    %c0_i32_0 = arith.constant 0 : i32
    %c0_i32_1 = arith.constant 0 : i32
    return %c0_i32, %c0_i32_0 : i32, i32
  }
  func.func @transform_3(%arg0: i32) -> (i32, i32) {
    %c0_i32 = arith.constant 0 : i32
    %c0_i32_0 = arith.constant 0 : i32
    return %arg0, %c0_i32 : i32, i32
  }
}

</mosaic_0001>

<bundles_post_ra>
// kernel: tpu_custom_call.1
= control target key start
LH: loop header
LB: loop body
LE: loop exit
PB: predicated region body
PF: predicated region fallthrough
CT: control target
= control target key end

     0   :  { %8 = vsyncpa [#allocation3], 0  ;;  %s190_s0 = inlined_call_operand.hbm [shape: f32[32,128], index: 0, kind: input, shape index: {}]   ;;  %s191_s1 = inlined_call_operand.vmem [shape: f32[1,128], index: 1, kind: input, shape index: {}]   ;;  %s192_s2 = inlined_call_operand.vmem [shape: f32[1,128], index: 2, kind: input, shape index: {}]   ;;  %s193_s3 = inlined_call_operand.hbm [shape: f32[32,128], index: 3, kind: output, shape index: {}]  }
   0x1   :  { %9 = vsyncpa [#allocation4], 0  ;;  %s130_s12 = smov [#allocation2]   ;;  %s82_s16 = scalar_lea.hbm %s190_s0, 512 }
   0x2   :  { %s15_s13 = sshll.u32 %s130_s12, 4  ;;  %p83_p0 = scmp.ne.s32.totalorder %s190_s0, %s82_s16  ;;  %s16_s13 = int_to_ptr.vmem [resolvable:$true] %s15_s13 }
   0x3   :  { %p86_p1 = scmp.lt.u32.totalorder %s82_s16, %s190_s0 }
   0x5   :  { %p88_p2 = pnand %p86_p1, %p83_p0 }
   0x7   :  { %91 = shalt.err (!%p88_p2)
}
   0x8   :  { %s92_s21 = scalar_lea.vmem %s16_s13, 512  ;;  %p97_p4 = scmp.lt.s32.totalorder %s16_s13, %s16_s13 }
   0x9   :  { %p93_p3 = scmp.ne.s32.totalorder %s16_s13, %s92_s21  ;;  %p98_p5 = scmp.lt.s32.totalorder %s92_s21, %s92_s21 }
   0xb   :  { %p99_p6 = por %p98_p5, %p97_p4 }
   0xd   :  { %p100_p7 = pnand %p99_p6, %p93_p3 }
   0xf   :  { %103 = shalt.err (!%p100_p7)
}
  0x10   :  { %s131_s22 = smov 128   ;;  %s132_s23 = smov 8  }
  0x11   :  { %21 = dma.hbm_to_vmem [thread:$0]  %s190_s0, 512, %s16_s13, [#allocation3], %s131_s22, %s131_s22, %s132_s23  }
  0x12   :  { %126 = dma.done.wait [#allocation3], 512  }
  0x13   :  { %127 = vsyncadd [#allocation3], 4294966784  ;;  %v29_v0 = vld [vmem:[#allocation2] sm:$0xff]  ;;  %v30_v4 = vld [vmem:[#allocation2 + $0x8] sm:$0xff]  ;;  %s133_s30 = smov [#allocation5]  }
  0x14   :  { %v76_v1 = vld [vmem:[%s191_s1] ss:$0 sm:$0xff]  ;;  %v31_v5 = vld [vmem:[#allocation2 + $0x10] sm:$0xff]  ;;  %v32_v6 = vld [vmem:[#allocation2 + $0x18] sm:$0xff]  ;;  %s64_s4 = sshll.u32 %s133_s30, 4  ;;  %s65_s4 = int_to_ptr.vmem [resolvable:$true] %s64_s4 }
  0x15   :  { %v77_v2 = vld [vmem:[%s192_s2] ss:$0 sm:$0xff]  ;;  %v40_v3 = vsub.f32 %v29_v0, %v76_v1  ;;  %v41_v7 = vsub.f32 %v30_v4, %v76_v1  ;;  %v42_v8 = vsub.f32 %v31_v5, %v76_v1  ;;  %v43_v9 = vsub.f32 %v32_v6, %v76_v1  ;;  %s104_s0 = scalar_lea.vmem %s65_s4, 512  ;;  %p109_p9 = scmp.lt.s32.totalorder %s65_s4, %s65_s4 }
  0x16   :  { %p105_p8 = scmp.ne.s32.totalorder %s65_s4, %s104_s0  ;;  %p110_p10 = scmp.lt.s32.totalorder %s104_s0, %s104_s0 }
  0x17   :  { %v51_v10 = vmul.f32 %v77_v2, %v40_v3  ;;  %v52_v11 = vmul.f32 %v77_v2, %v41_v7  ;;  %v53_v12 = vmul.f32 %v77_v2, %v42_v8  ;;  %v54_v13 = vmul.f32 %v77_v2, %v43_v9 }
  0x18   :  { %p111_p11 = por %p110_p10, %p109_p9 }
  0x19   :  { %55 = vst [vmem:[#allocation5] sm:$0xff] %v51_v10  ;;  %56 = vst [vmem:[#allocation5 + $0x8] sm:$0xff] %v52_v11 }
  0x1a   :  { %57 = vst [vmem:[#allocation5 + $0x10] sm:$0xff] %v53_v12  ;;  %58 = vst [vmem:[#allocation5 + $0x18] sm:$0xff] %v54_v13  ;;  %p112_p12 = pnand %p111_p11, %p105_p8 }
  0x1c   :  { %115 = shalt.err (!%p112_p12)
}
  0x1d   :  { %s116_s5 = scalar_lea.hbm %s193_s3, 512 }
  0x1e   :  { %p117_p13 = scmp.ne.s32.totalorder %s193_s3, %s116_s5  ;;  %p120_p0 = scmp.lt.u32.totalorder %s116_s5, %s193_s3 }
  0x20   :  { %p122_p1 = pnand %p120_p0, %p117_p13 }
  0x22   :  { %125 = shalt.err (!%p122_p1)
}
  0x23   :  { %70 = dma.vmem_to_hbm [thread:$0]  %s65_s4, 512, %s193_s3, [#allocation4], %s131_s22, %s131_s22, %s132_s23  }
  0x24   :  { %128 = dma.done.wait [#allocation4], 512  }
  0x25   :  { %129 = vsyncadd [#allocation4], 4294966784 }
  0x26   :  { %74 = vsyncpa [#allocation3], 1 }
  0x27   :  { %75 = vsyncpa [#allocation4], 1 }

</bundles_post_ra>
